<compile_context>
chip_gen: v5e
topology: v5e:2x2
jax: 0.10.0
libtpu: 0.0.40
codegen_flags: <defaults>
</compile_context>

<pallas_src>
import math
import jax
import jax.numpy as jnp
from jax.experimental import pallas as pl
from jax.experimental.pallas import tpu as pltpu

LOG_OFFSET = 1e-6

SAMPLE_RATE = 16000
N_FFT = 512
WIN_LENGTH = 400
HOP_LENGTH = 160

N_MELS = 64                      # true feature width
N_MELS_PAD = 128                 # lane-dense output width (sliced back to 64)

N_FREQ_FULL = N_FFT // 2 + 1     # 257 (rfft bins)
N_FREQ = 256                     # Nyquist bin dropped (mel weight == 0)
F_PAD = 256                      # already a lane multiple — no freq padding

TM_MAX = 1024                    # time-tile upper bound; per-step compute then
                                 # comfortably exceeds grid-step overhead on
                                 # v6e/v7x, ~3 us/step on v5e.  VMEM at
                                 # tm=1024 is ~10 MiB incl. double buffers.


def _round_up(x: int, m: int) -> int:
    return ((x + m - 1) // m) * m


def _cdiv(a: int, b: int) -> int:
    return -(-a // b)


# ----------------------------------------------------------------------------
# Parameter setup (deterministic, plain JAX)
# ----------------------------------------------------------------------------
def _hann_window(win_length: int) -> jnp.ndarray:
    # torch.hann_window(win_length, periodic=True)
    n = jnp.arange(win_length, dtype=jnp.float32)
    return 0.5 - 0.5 * jnp.cos(2.0 * math.pi * n / win_length)


def _dft_basis() -> jnp.ndarray:
    """Fused windowed real|imag DFT basis, shape (n_fft, 2*F_PAD) = (512, 512).

    Columns [0, F_PAD) are the cosine basis, columns [F_PAD, 2*F_PAD) the sine
    basis, both restricted to the first 256 rfft bins (Nyquist dropped — its
    mel weight is exactly zero).  One MXU matmul produces both re and im.
    """
    win = _hann_window(WIN_LENGTH)
    pad_l = (N_FFT - WIN_LENGTH) // 2
    pad_r = N_FFT - WIN_LENGTH - pad_l
    win_full = jnp.pad(win, (pad_l, pad_r))                       # (n_fft,)

    n = jnp.arange(N_FFT, dtype=jnp.float32)[:, None]             # (n_fft, 1)
    k = jnp.arange(N_FREQ, dtype=jnp.float32)[None, :]            # (1, 256)
    ang = 2.0 * math.pi * n * k / N_FFT
    cos_m = win_full[:, None] * jnp.cos(ang)                      # (n_fft, 256)
    sin_m = -win_full[:, None] * jnp.sin(ang)
    basis = jnp.concatenate([cos_m, sin_m], axis=1)               # (n_fft, 512)
    return basis.astype(jnp.float32)


def _mel_filterbank() -> jnp.ndarray:
    """torchaudio melscale_fbanks (htk, norm=None), shape (F_PAD, N_MELS_PAD)."""
    f_min, f_max = 0.0, SAMPLE_RATE / 2.0
    all_freqs = jnp.linspace(0.0, SAMPLE_RATE / 2.0, N_FREQ_FULL)  # (257,)

    def hz_to_mel(f):
        return 2595.0 * jnp.log10(1.0 + f / 700.0)

    def mel_to_hz(m):
        return 700.0 * (10.0 ** (m / 2595.0) - 1.0)

    m_min = hz_to_mel(jnp.asarray(f_min))
    m_max = hz_to_mel(jnp.asarray(f_max))
    m_pts = jnp.linspace(m_min, m_max, N_MELS + 2)
    f_pts = mel_to_hz(m_pts)                                       # (n_mels+2,)

    f_diff = f_pts[1:] - f_pts[:-1]                                # (n_mels+1,)
    slopes = f_pts[None, :] - all_freqs[:, None]                   # (257, n_mels+2)
    down = -slopes[:, :-2] / f_diff[:-1]
    up = slopes[:, 2:] / f_diff[1:]
    fb = jnp.maximum(0.0, jnp.minimum(down, up))                   # (257, n_mels)
    fb = fb[:N_FREQ, :]                                            # drop Nyquist row (== 0)
    # zero columns beyond 64 mels so the kernel store is lane-dense (128 wide)
    fb = jnp.pad(fb, ((0, 0), (0, N_MELS_PAD - N_MELS)))
    return fb.astype(jnp.float32)


def _frame_waveform_bf16(waveform: jnp.ndarray, n_frames: int,
                         t_pad: int) -> jnp.ndarray:
    """center=True framing -> (t_pad, n_fft) bf16 (zero-padded time rows).

    The cast to bf16 happens on the 1-D padded waveform *before* the gather,
    so no f32 (T, 512) intermediate is ever written to HBM.
    """
    length = waveform.shape[0]
    if length >= N_FFT // 2 + 1:
        padded = jnp.pad(waveform, (N_FFT // 2, N_FFT // 2), mode="reflect")
    else:
        # reflect padding is ill-defined for very short inputs; fall back.
        padded = jnp.pad(waveform, (N_FFT // 2, N_FFT // 2))
    padded_bf = padded.astype(jnp.bfloat16)                        # 1-D cast
    idx = (jnp.arange(n_frames)[:, None] * HOP_LENGTH
           + jnp.arange(N_FFT)[None, :])
    frames = padded_bf[idx]                                        # (T, n_fft) bf16
    frames = jnp.pad(frames, ((0, t_pad - n_frames), (0, 0)))
    return frames


# ----------------------------------------------------------------------------
# Pallas kernel: fused DFT (1 MXU matmul) + power spectrum (VPU)
#                + mel projection (MXU matmul) + log (EUP)
# ----------------------------------------------------------------------------
def melspec_kernel(frames_ref, basis_ref, melfb_ref, out_ref):
    fr = frames_ref[...]                                           # (tm, n_fft) bf16
    # one bf16 MXU matmul produces [re | im] with f32 accumulation
    y = jnp.dot(fr, basis_ref[...], preferred_element_type=jnp.float32)  # (tm, 512)
    re = y[:, :F_PAD]                                              # 128-aligned slices
    im = y[:, F_PAD:]
    power = re * re + im * im                                      # (tm, 256) f32
    # bf16 inputs to the mel matmul as well (f32 accumulation on the MXU)
    mel = jnp.dot(power.astype(jnp.bfloat16), melfb_ref[...],
                  preferred_element_type=jnp.float32)              # (tm, 128)
    out_ref[...] = jnp.log(mel + LOG_OFFSET)                       # lane-dense store


def mel_spectrogram_audio_transform(waveform: jnp.ndarray) -> jnp.ndarray:
    """waveform (L,) float32 @16kHz -> log-mel features (T, n_mels) float32."""
    length = waveform.shape[0]
    n_frames = 1 + length // HOP_LENGTH

    # Tile sizing:
    #   * multiples of 16 (bf16 sublane packing) for both tm and t_pad,
    #   * large tiles to amortize the ~0.35 us grid-step overhead,
    #   * for non-tiny clips keep >= 2 grid steps so the "parallel" time axis
    #     actually shards across v7x's two TensorCores.
    n16 = _round_up(n_frames, 16)
    if n16 <= 32:
        tm = n16                                        # tiny clip: one step
    else:
        tm = min(TM_MAX, _round_up(_cdiv(n16, 2), 16))  # >= 2 grid steps
    t_pad = _round_up(n16, tm)

    frames_bf = _frame_waveform_bf16(waveform, n_frames, t_pad)    # (t_pad, 512) bf16
    basis_bf = _dft_basis().astype(jnp.bfloat16)                   # (512, 512) bf16
    melfb_bf = _mel_filterbank().astype(jnp.bfloat16)              # (256, 128) bf16

    cost = pl.CostEstimate(
        flops=int(2 * t_pad * N_FFT * 2 * F_PAD          # DFT matmul
                  + 3 * t_pad * F_PAD                     # power spectrum
                  + 2 * t_pad * F_PAD * N_MELS_PAD),      # mel matmul
        transcendentals=int(t_pad * N_MELS_PAD),          # log
        bytes_accessed=int(frames_bf.size * 2 + basis_bf.size * 2
                           + melfb_bf.size * 2 + t_pad * N_MELS_PAD * 4),
    )

    out = pl.pallas_call(
        melspec_kernel,
        out_shape=jax.ShapeDtypeStruct((t_pad, N_MELS_PAD), jnp.float32),
        grid_spec=pltpu.PrefetchScalarGridSpec(
            num_scalar_prefetch=0,
            grid=(t_pad // tm,),
            in_specs=[
                pl.BlockSpec((tm, N_FFT), lambda i: (i, 0)),
                # constant block index -> fetched once, never re-DMA'd
                pl.BlockSpec((N_FFT, 2 * F_PAD), lambda i: (0, 0)),
                pl.BlockSpec((F_PAD, N_MELS_PAD), lambda i: (0, 0)),
            ],
            out_specs=pl.BlockSpec((tm, N_MELS_PAD), lambda i: (i, 0)),
        ),
        compiler_params=pltpu.CompilerParams(
            dimension_semantics=("parallel",),
        ),
        cost_estimate=cost,
    )(frames_bf, basis_bf, melfb_bf)

    # drop padded time rows and padded mel lanes
    return out[:n_frames, :N_MELS]                                 # (T, n_mels)


if __name__ == "__main__":
    key = jax.random.PRNGKey(0)
    # Deterministic synthetic 0.1 s waveform at 16 kHz (already resampled).
    waveform = jax.random.normal(key, (1600,), dtype=jnp.float32) * 0.1

    audio = mel_spectrogram_audio_transform(waveform)
    audio = jax.block_until_ready(audio)

    expected_t = 1 + waveform.shape[0] // HOP_LENGTH
    assert audio.shape == (expected_t, N_MELS), audio.shape
    assert audio.dtype == jnp.float32
    assert bool(jnp.all(jnp.isfinite(audio)))
    print("KERNEL_OK")
</pallas_src>

<mosaic_0001>
module attributes {stable_mosaic.version = 11 : i64} {
  func.func @melspec_kernel(%arg0: i32, %arg1: memref<16x512xbf16, #tpu.memory_space<vmem>>, %arg2: memref<512x512xbf16, #tpu.memory_space<vmem>>, %arg3: memref<256x128xbf16, #tpu.memory_space<vmem>>, %arg4: memref<16x128xf32, #tpu.memory_space<vmem>>) attributes {dimension_semantics = [#tpu.dimension_semantics<parallel>], iteration_bounds = array<i64: 1>, scalar_prefetch = 0 : i64, scratch_operands = 0 : i64, tpu.core_type = #tpu.core_type<tc>, window_params = [{transform_indices = @transform_0, window_bounds = array<i64: 16, 512>}, {pipeline_mode = #tpu.pipeline_mode<synchronous>, transform_indices = @transform_1, window_bounds = array<i64: 512, 512>}, {pipeline_mode = #tpu.pipeline_mode<synchronous>, transform_indices = @transform_2, window_bounds = array<i64: 256, 128>}, {transform_indices = @transform_3, window_bounds = array<i64: 16, 128>}]} {
    %c0 = arith.constant 0 : index
    %c0_0 = arith.constant 0 : index
    %0 = vector.load %arg1[%c0, %c0_0] : memref<16x512xbf16, #tpu.memory_space<vmem>>, vector<16x512xbf16>
    %c0_1 = arith.constant 0 : index
    %c0_2 = arith.constant 0 : index
    %1 = vector.load %arg2[%c0_1, %c0_2] : memref<512x512xbf16, #tpu.memory_space<vmem>>, vector<512x512xbf16>
    %cst = arith.constant dense<0.000000e+00> : vector<16x512xf32>
    %2 = tpu.matmul %0, %1, %cst {dimension_numbers = #tpu.dot_dimension_numbers<[1], [0], [0], [1], [0, 0, 1, 1], [], []>} : vector<16x512xbf16>, vector<512x512xbf16>, vector<16x512xf32> -> vector<16x512xf32>
    %3 = vector.extract_strided_slice %2 {offsets = [0, 0], sizes = [16, 256], strides = [1, 1]} : vector<16x512xf32> to vector<16x256xf32>
    %4 = vector.extract_strided_slice %2 {offsets = [0, 256], sizes = [16, 256], strides = [1, 1]} : vector<16x512xf32> to vector<16x256xf32>
    %5 = arith.mulf %3, %3 : vector<16x256xf32>
    %6 = arith.mulf %4, %4 : vector<16x256xf32>
    %7 = arith.addf %5, %6 : vector<16x256xf32>
    %8 = arith.truncf %7 : vector<16x256xf32> to vector<16x256xbf16>
    %c0_3 = arith.constant 0 : index
    %c0_4 = arith.constant 0 : index
    %9 = vector.load %arg3[%c0_3, %c0_4] : memref<256x128xbf16, #tpu.memory_space<vmem>>, vector<256x128xbf16>
    %cst_5 = arith.constant dense<0.000000e+00> : vector<16x128xf32>
    %10 = tpu.matmul %8, %9, %cst_5 {dimension_numbers = #tpu.dot_dimension_numbers<[1], [0], [0], [1], [0, 0, 1, 1], [], []>} : vector<16x256xbf16>, vector<256x128xbf16>, vector<16x128xf32> -> vector<16x128xf32>
    %cst_6 = arith.constant 9.99999997E-7 : f32
    %11 = vector.broadcast %cst_6 : f32 to vector<16x128xf32>
    %12 = arith.addf %10, %11 : vector<16x128xf32>
    %13 = math.log %12 : vector<16x128xf32>
    %c0_7 = arith.constant 0 : index
    %c0_8 = arith.constant 0 : index
    %14 = vector.load %arg4[%c0_7, %c0_8] : memref<16x128xf32, #tpu.memory_space<vmem>>, vector<16x128xf32>
    tpu.vector_store %arg4[%c0_7, %c0_8], %13 {strides = array<i32>} : memref<16x128xf32, #tpu.memory_space<vmem>>, vector<16x128xf32>,
    return
  }
  func.func @transform_0(%arg0: i32) -> (i32, i32) {
    %c0_i32 = arith.constant 0 : i32
    %c0_i32_0 = arith.constant 0 : i32
    return %arg0, %c0_i32 : i32, i32
  }
  func.func @transform_1(%arg0: i32) -> (i32, i32) {
    %c0_i32 = arith.constant 0 : i32
    %c0_i32_0 = arith.constant 0 : i32
    %c0_i32_1 = arith.constant 0 : i32
    return %c0_i32, %c0_i32_0 : i32, i32
  }
  func.func @transform_2(%arg0: i32) -> (i32, i32) {
    %c0_i32 = arith.constant 0 : i32
    %c0_i32_0 = arith.constant 0 : i32
    %c0_i32_1 = arith.constant 0 : i32
    return %c0_i32, %c0_i32_0 : i32, i32
  }
  func.func @transform_3(%arg0: i32) -> (i32, i32) {
    %c0_i32 = arith.constant 0 : i32
    %c0_i32_0 = arith.constant 0 : i32
    return %arg0, %c0_i32 : i32, i32
  }
}

</mosaic_0001>

<bundles_post_ra>
// kernel: tpu_custom_call.1
= control target key start
LH: loop header
LB: loop body
LE: loop exit
PB: predicated region body
PF: predicated region fallthrough
CT: control target
= control target key end

     0   :  { %8 = vsyncpa [#allocation3], 0  ;;  %s2202_s0 = inlined_call_operand.hbm [shape: bf16[16,512], index: 0, kind: input, shape index: {}]   ;;  %s2203_s1 = inlined_call_operand.hbm [shape: bf16[512,512], index: 1, kind: input, shape index: {}]   ;;  %s2204_s2 = inlined_call_operand.hbm [shape: bf16[256,128], index: 2, kind: input, shape index: {}]   ;;  %s2205_s3 = inlined_call_operand.hbm [shape: f32[16,128], index: 3, kind: output, shape index: {}]  }
   0x1   :  { %9 = vsyncpa [#allocation6], 0 }
   0x2   :  { %10 = vsyncpa [#allocation4], 0  ;;  %s28_s14 = sshll.u32 %s2203_s1, 4  ;;  %s2130_s15 = smov [#allocation5]   ;;  %s29_s14 = int_to_ptr.hbm [resolvable:$true] %s28_s14 }
   0x3   :  { %s30_s16 = sshll.u32 %s2130_s15, 4  ;;  %s15_s19 = sshll.u32 %s2202_s0, 4  ;;  %s31_s16 = int_to_ptr.vmem [resolvable:$true] %s30_s16  ;;  %s16_s19 = int_to_ptr.hbm [resolvable:$true] %s15_s19 }
   0x4   :  { %s2131_s20 = smov 256   ;;  %s2132_s21 = smov 16  }
   0x5   :  { %36 = dma.hbm_to_vmem [thread:$0]  %s29_s14, 16384, %s31_s16, [#allocation6], %s2131_s20, %s2131_s20, %s2132_s21  }
   0x6   :  { %s2133_s22 = smov [#allocation2]   ;;  %s41_s26 = sshll.u32 %s2204_s2, 4  ;;  %s42_s26 = int_to_ptr.hbm [resolvable:$true] %s41_s26 }
   0x7   :  { %s17_s23 = sshll.u32 %s2133_s22, 4  ;;  %s2134_s1 = smov [#allocation7]   ;;  %s18_s23 = int_to_ptr.vmem [resolvable:$true] %s17_s23 }
   0x8   :  { %23 = dma.hbm_to_vmem [thread:$0]  %s16_s19, 512, %s18_s23, [#allocation3], %s2131_s20, %s2131_s20, %s2132_s21  }
   0x9   :  { %s43_s27 = sshll.u32 %s2134_s1, 4  ;;  %s2135_s28 = smov 64   ;;  %s44_s27 = int_to_ptr.vmem [resolvable:$true] %s43_s27 }
   0xa   :  { %s2136_s29 = smov 4  }
   0xb   :  { %49 = dma.hbm_to_vmem [thread:$0]  %s42_s26, 2048, %s44_s27, [#allocation6], %s2135_s28, %s2135_s28, %s2136_s29  }
   0xc   :  { %2124 = dma.done.wait [#allocation3], 512  }
   0xd   :  { %2125 = vsyncadd [#allocation3], 4294966784 }
   0xe   :  { %2126 = dma.done.wait [#allocation6], 18432  }
   0xf   :  { %2127 = vsyncadd [#allocation6], 4294948864  ;;  %v1404_v0 = vld [vmem:[#allocation5 + $0xe0] sm:$0xf]  ;;  %v1900_v1 = vld [vmem:[#allocation5 + $0xec] sm:$0xf0] }
  0x10   :  { %v1532_v2 = vld [vmem:[#allocation5 + $0x1e0] sm:$0xf]  ;;  %v1405_v3 = vor.u32 %v1900_v1, %v1404_v0  ;;  %v1932_v4 = vld [vmem:[#allocation5 + $0x1ec] sm:$0xf0]  ;;  %s2137_s0 = smov [#allocation8]   ;;  %s1260_s5 = sshll.u32 %s2205_s3, 4  ;;  %s1261_s5 = int_to_ptr.hbm [resolvable:$true] %s1260_s5 }
  0x11   :  { %v1660_v5 = vld [vmem:[#allocation5 + $0x2e0] sm:$0xf]  ;;  %v1964_v6 = vld [vmem:[#allocation5 + $0x2ec] sm:$0xf0]  ;;  %v1533_v7 = vor.u32 %v1932_v4, %v1532_v2  ;;  %s1258_s2 = sshll.u32 %s2137_s0, 4  ;;  %s2138_s6 = smov 128   ;;  %s1259_s2 = int_to_ptr.vmem [resolvable:$true] %s1258_s2 }
  0x12   :  { %v1661_v8 = vor.u32 %v1964_v6, %v1660_v5  ;;  %v1788_v9 = vld [vmem:[#allocation5 + $0x3e0] sm:$0xf]  ;;  %v1996_v10 = vld [vmem:[#allocation5 + $0x3ec] sm:$0xf0]  ;;  %854 = vmatpush.bf16.msra.mxu0 %v1405_v3  ;;  %s2139_s7 = smov 8  }
  0x13   :  { %v1388_v11 = vld [vmem:[#allocation5 + $0xc0] sm:$0xf]  ;;  %v1789_v12 = vor.u32 %v1996_v10, %v1788_v9  ;;  %v1896_v13 = vld [vmem:[#allocation5 + $0xcc] sm:$0xf0]  ;;  %868 = vmatpush.bf16.msra.mxu1 %v1533_v7 }
  0x14   :  { %v1516_v14 = vld [vmem:[#allocation5 + $0x1c0] sm:$0xf]  ;;  %v1928_v15 = vld [vmem:[#allocation5 + $0x1cc] sm:$0xf0]  ;;  %882 = vmatpush.bf16.msra.mxu2 %v1661_v8  ;;  %v1389_v16 = vor.u32 %v1896_v13, %v1388_v11 }
  0x15   :  { %v1517_v17 = vor.u32 %v1928_v15, %v1516_v14  ;;  %v1644_v18 = vld [vmem:[#allocation5 + $0x2c0] sm:$0xf]  ;;  %v1960_v19 = vld [vmem:[#allocation5 + $0x2cc] sm:$0xf0]  ;;  %896 = vmatpush.bf16.msra.mxu3 %v1789_v12 }
  0x16   :  { %v1772_v20 = vld [vmem:[#allocation5 + $0x3c0] sm:$0xf]  ;;  %v1645_v21 = vor.u32 %v1960_v19, %v1644_v18  ;;  %v1992_v22 = vld [vmem:[#allocation5 + $0x3cc] sm:$0xf0]  ;;  %855 = vmatpush.bf16.msra.mxu0 %v1389_v16 }
  0x17   :  { %v1372_v23 = vld [vmem:[#allocation5 + $0xa0] sm:$0xf]  ;;  %v1892_v24 = vld [vmem:[#allocation5 + $0xac] sm:$0xf0]  ;;  %v1773_v25 = vor.u32 %v1992_v22, %v1772_v20  ;;  %869 = vmatpush.bf16.msra.mxu1 %v1517_v17 }
  0x18   :  { %v1500_v26 = vld [vmem:[#allocation5 + $0x1a0] sm:$0xf]  ;;  %v1924_v27 = vld [vmem:[#allocation5 + $0x1ac] sm:$0xf0]  ;;  %v1373_v29 = vor.u32 %v1892_v24, %v1372_v23  ;;  %883 = vmatpush.bf16.msra.mxu2 %v1645_v21 }
  0x19   :  { %v1628_v28 = vld [vmem:[#allocation5 + $0x2a0] sm:$0xf]  ;;  %v1956_v30 = vld [vmem:[#allocation5 + $0x2ac] sm:$0xf0]  ;;  %v1501_v33 = vor.u32 %v1924_v27, %v1500_v26  ;;  %897 = vmatpush.bf16.msra.mxu3 %v1773_v25 }
  0x1a   :  { %v1756_v31 = vld [vmem:[#allocation5 + $0x3a0] sm:$0xf]  ;;  %v1988_v32 = vld [vmem:[#allocation5 + $0x3ac] sm:$0xf0]  ;;  %v1629_v34 = vor.u32 %v1956_v30, %v1628_v28  ;;  %856 = vmatpush.bf16.msra.mxu0 %v1373_v29  ;;  %v1898_v28 = vld [vmem:[#allocation5 + $0xe4] sm:$0xf] }
  0x1b   :  { %v1356_v35 = vld [vmem:[#allocation5 + $0x80] sm:$0xf]  ;;  %v1888_v36 = vld [vmem:[#allocation5 + $0x8c] sm:$0xf0]  ;;  %v1757_v38 = vor.u32 %v1988_v32, %v1756_v31  ;;  %870 = vmatpush.bf16.msra.mxu1 %v1501_v33  ;;  %v1406_v29 = vld [vmem:[#allocation5 + $0xf0] sm:$0xf0] }
  0x1c   :  { %v1484_v37 = vld [vmem:[#allocation5 + $0x180] sm:$0xf]  ;;  %v1920_v39 = vld [vmem:[#allocation5 + $0x18c] sm:$0xf0]  ;;  %v1357_v44 = vor.u32 %v1888_v36, %v1356_v35  ;;  %884 = vmatpush.bf16.msra.mxu2 %v1629_v34  ;;  %v1930_v30 = vld [vmem:[#allocation5 + $0x1e4] sm:$0xf] }
  0x1d   :  { %v1612_v40 = vld [vmem:[#allocation5 + $0x280] sm:$0xf]  ;;  %v1952_v41 = vld [vmem:[#allocation5 + $0x28c] sm:$0xf0]  ;;  %v1485_v45 = vor.u32 %v1920_v39, %v1484_v37  ;;  %898 = vmatpush.bf16.msra.mxu3 %v1757_v38  ;;  %v1534_v32 = vld [vmem:[#allocation5 + $0x1f0] sm:$0xf0] }
  0x1e   :  { %v1740_v42 = vld [vmem:[#allocation5 + $0x380] sm:$0xf]  ;;  %v1984_v43 = vld [vmem:[#allocation5 + $0x38c] sm:$0xf0]  ;;  %v1613_v46 = vor.u32 %v1952_v41, %v1612_v40  ;;  %857 = vmatpush.bf16.msra.mxu0 %v1357_v44  ;;  %v1962_v33 = vld [vmem:[#allocation5 + $0x2e4] sm:$0xf]  ;;  %v1409_v40 = vor.u32 %v1898_v28, %v1406_v29  ;;  %v1537_v41 = vor.u32 %v1930_v30, %v1534_v32 }
  0x1f   :  { %v1340_v47 = vld [vmem:[#allocation5 + $0x60] sm:$0xf]  ;;  %v1884_v48 = vld [vmem:[#allocation5 + $0x6c] sm:$0xf0]  ;;  %v1741_v50 = vor.u32 %v1984_v43, %v1740_v42  ;;  %871 = vmatpush.bf16.msra.mxu1 %v1485_v45  ;;  %v1662_v34 = vld [vmem:[#allocation5 + $0x2f0] sm:$0xf0] }
  0x20   :  { %v1468_v49 = vld [vmem:[#allocation5 + $0x160] sm:$0xf]  ;;  %v1916_v51 = vld [vmem:[#allocation5 + $0x16c] sm:$0xf0]  ;;  %v1341_v56 = vor.u32 %v1884_v48, %v1340_v47  ;;  %885 = vmatpush.bf16.msra.mxu2 %v1613_v46  ;;  %v1994_v37 = vld [vmem:[#allocation5 + $0x3e4] sm:$0xf]  ;;  %v1665_v42 = vor.u32 %v1962_v33, %v1662_v34 }
  0x21   :  { %v1596_v52 = vld [vmem:[#allocation5 + $0x260] sm:$0xf]  ;;  %v1948_v53 = vld [vmem:[#allocation5 + $0x26c] sm:$0xf0]  ;;  %v1469_v57 = vor.u32 %v1916_v51, %v1468_v49  ;;  %899 = vmatpush.bf16.msra.mxu3 %v1741_v50  ;;  %v1790_v38 = vld [vmem:[#allocation5 + $0x3f0] sm:$0xf0] }
  0x22   :  { %v1724_v54 = vld [vmem:[#allocation5 + $0x360] sm:$0xf]  ;;  %v1980_v55 = vld [vmem:[#allocation5 + $0x36c] sm:$0xf0]  ;;  %v1597_v58 = vor.u32 %v1948_v53, %v1596_v52  ;;  %858 = vmatpush.bf16.msra.mxu0 %v1341_v56  ;;  %v1894_v43 = vld [vmem:[#allocation5 + $0xc4] sm:$0xf]  ;;  %v1793_v46 = vor.u32 %v1994_v37, %v1790_v38 }
  0x23   :  { %v1324_v59 = vld [vmem:[#allocation5 + $0x40] sm:$0xf]  ;;  %v1880_v60 = vld [vmem:[#allocation5 + $0x4c] sm:$0xf0]  ;;  %v1725_v62 = vor.u32 %v1980_v55, %v1724_v54  ;;  %872 = vmatpush.bf16.msra.mxu1 %v1469_v57  ;;  %v1390_v44 = vld [vmem:[#allocation5 + $0xd0] sm:$0xf0] }
  0x24   :  { %v1452_v61 = vld [vmem:[#allocation5 + $0x140] sm:$0xf]  ;;  %v1912_v63 = vld [vmem:[#allocation5 + $0x14c] sm:$0xf0]  ;;  %v1325_v4 = vor.u32 %v1880_v60, %v1324_v59  ;;  %886 = vmatpush.bf16.msra.mxu2 %v1597_v58  ;;  %v1926_v45 = vld [vmem:[#allocation5 + $0x1c4] sm:$0xf]  ;;  %v1393_v52 = vor.u32 %v1894_v43, %v1390_v44 }
  0x25   :  { %v1580_v0 = vld [vmem:[#allocation5 + $0x240] sm:$0xf]  ;;  %v1944_v1 = vld [vmem:[#allocation5 + $0x24c] sm:$0xf0]  ;;  %v1453_v5 = vor.u32 %v1912_v63, %v1452_v61  ;;  %900 = vmatpush.bf16.msra.mxu3 %v1725_v62  ;;  %v1518_v47 = vld [vmem:[#allocation5 + $0x1d0] sm:$0xf0] }
  0x26   :  { %v1708_v2 = vld [vmem:[#allocation5 + $0x340] sm:$0xf]  ;;  %v1976_v3 = vld [vmem:[#allocation5 + $0x34c] sm:$0xf0]  ;;  %v1581_v6 = vor.u32 %v1944_v1, %v1580_v0  ;;  %859 = vmatpush.bf16.msra.mxu0 %v1325_v4  ;;  %v1958_v48 = vld [vmem:[#allocation5 + $0x2c4] sm:$0xf]  ;;  %v1521_v53 = vor.u32 %v1926_v45, %v1518_v47 }
  0x27   :  { %v1308_v7 = vld [vmem:[#allocation5 + $0x20] sm:$0xf]  ;;  %v1876_v8 = vld [vmem:[#allocation5 + $0x2c] sm:$0xf0]  ;;  %v1709_v10 = vor.u32 %v1976_v3, %v1708_v2  ;;  %873 = vmatpush.bf16.msra.mxu1 %v1453_v5  ;;  %v1646_v49 = vld [vmem:[#allocation5 + $0x2d0] sm:$0xf0] }
  0x28   :  { %v1436_v9 = vld [vmem:[#allocation5 + $0x120] sm:$0xf]  ;;  %v1908_v11 = vld [vmem:[#allocation5 + $0x12c] sm:$0xf0]  ;;  %v1309_v16 = vor.u32 %v1876_v8, %v1308_v7  ;;  %887 = vmatpush.bf16.msra.mxu2 %v1581_v6  ;;  %v1990_v50 = vld [vmem:[#allocation5 + $0x3c4] sm:$0xf]  ;;  %v1649_v54 = vor.u32 %v1958_v48, %v1646_v49 }
  0x29   :  { %v1564_v12 = vld [vmem:[#allocation5 + $0x220] sm:$0xf]  ;;  %v1940_v13 = vld [vmem:[#allocation5 + $0x22c] sm:$0xf0]  ;;  %v1437_v19 = vor.u32 %v1908_v11, %v1436_v9  ;;  %901 = vmatpush.bf16.msra.mxu3 %v1709_v10  ;;  %v1774_v51 = vld [vmem:[#allocation5 + $0x3d0] sm:$0xf0] }
  0x2a   :  { %v1692_v14 = vld [vmem:[#allocation5 + $0x320] sm:$0xf]  ;;  %v1972_v15 = vld [vmem:[#allocation5 + $0x32c] sm:$0xf0]  ;;  %v1565_v20 = vor.u32 %v1940_v13, %v1564_v12  ;;  %860 = vmatpush.bf16.msra.mxu0 %v1309_v16  ;;  %v1890_v55 = vld [vmem:[#allocation5 + $0xa4] sm:$0xf]  ;;  %v1777_v58 = vor.u32 %v1990_v50, %v1774_v51 }
  0x2b   :  { %v1292_v17 = vld [vmem:[#allocation5] sm:$0xf]  ;;  %v1872_v18 = vld [vmem:[#allocation5 + $0xc] sm:$0xf0]  ;;  %v1693_v24 = vor.u32 %v1972_v15, %v1692_v14  ;;  %874 = vmatpush.bf16.msra.mxu1 %v1437_v19  ;;  %v1374_v56 = vld [vmem:[#allocation5 + $0xb0] sm:$0xf0] }
  0x2c   :  { %v1420_v21 = vld [vmem:[#allocation5 + $0x100] sm:$0xf]  ;;  %v1904_v22 = vld [vmem:[#allocation5 + $0x10c] sm:$0xf0]  ;;  %v1293_v31 = vor.u32 %v1872_v18, %v1292_v17  ;;  %888 = vmatpush.bf16.msra.mxu2 %v1565_v20  ;;  %v1922_v57 = vld [vmem:[#allocation5 + $0x1a4] sm:$0xf]  ;;  %v1377_v1 = vor.u32 %v1890_v55, %v1374_v56 }
  0x2d   :  { %v1548_v23 = vld [vmem:[#allocation5 + $0x200] sm:$0xf]  ;;  %v1936_v25 = vld [vmem:[#allocation5 + $0x20c] sm:$0xf0]  ;;  %v1421_v35 = vor.u32 %v1904_v22, %v1420_v21  ;;  %902 = vmatpush.bf16.msra.mxu3 %v1693_v24  ;;  %v1502_v59 = vld [vmem:[#allocation5 + $0x1b0] sm:$0xf0] }
  0x2e   :  { %v1676_v26 = vld [vmem:[#allocation5 + $0x300] sm:$0xf]  ;;  %v1968_v27 = vld [vmem:[#allocation5 + $0x30c] sm:$0xf0]  ;;  %v1549_v36 = vor.u32 %v1936_v25, %v1548_v23  ;;  %861 = vmatpush.bf16.msra.mxu0 %v1293_v31  ;;  %v1954_v60 = vld [vmem:[#allocation5 + $0x2a4] sm:$0xf]  ;;  %v1505_v5 = vor.u32 %v1922_v57, %v1502_v59 }
  0x2f   :  { %v1677_v39 = vor.u32 %v1968_v27, %v1676_v26  ;;  %875 = vmatpush.bf16.msra.mxu1 %v1421_v35  ;;  %v1630_v61 = vld [vmem:[#allocation5 + $0x2b0] sm:$0xf0]  ;;  %v1986_v62 = vld [vmem:[#allocation5 + $0x3a4] sm:$0xf]  ;;  %v1284_v3 = vld [vmem:[#allocation2 + $0x8] sm:$0xf] }
  0x30   :  { %889 = vmatpush.bf16.msra.mxu2 %v1549_v36  ;;  %v1758_v63 = vld [vmem:[#allocation5 + $0x3b0] sm:$0xf0]  ;;  %v1886_v0 = vld [vmem:[#allocation5 + $0x84] sm:$0xf]  ;;  %v1869_v4 = vld [vmem:[#allocation2 + $0x14] sm:$0xf0]  ;;  %v1633_v6 = vor.u32 %v1954_v60, %v1630_v61 }
  0x31   :  { %903 = vmatpush.bf16.msra.mxu3 %v1677_v39  ;;  %v1358_v2 = vld [vmem:[#allocation5 + $0x90] sm:$0xf0]  ;;  %v1918_v7 = vld [vmem:[#allocation5 + $0x184] sm:$0xf]  ;;  %v2169_v8 = vor.u32 %v1869_v4, %v1284_v3  ;;  %v1867_v9 = vld [vmem:[#allocation2 + $0xc] sm:$0xf]  ;;  %v1761_v11 = vor.u32 %v1986_v62, %v1758_v63 }
  0x32   :  { %910 = vmatpush.bf16.msrb.mxu0 %v1409_v40  ;;  %v1286_v10 = vld [vmem:[#allocation2 + $0x18] sm:$0xf0]  ;;  %v1486_v12 = vld [vmem:[#allocation5 + $0x190] sm:$0xf0]  ;;  %v1950_v13 = vld [vmem:[#allocation5 + $0x284] sm:$0xf]  ;;  %v1361_v19 = vor.u32 %v1886_v0, %v1358_v2 }
  0x33   :  { %924 = vmatpush.bf16.msrb.mxu1 %v1537_v41  ;;  %v1614_v14 = vld [vmem:[#allocation5 + $0x290] sm:$0xf0]  ;;  %v2171_v15 = vor.u32 %v1867_v9, %v1286_v10  ;;  %v1982_v16 = vld [vmem:[#allocation5 + $0x384] sm:$0xf]  ;;  %890 = vmatmul.bf16.vlgmr.msra.gmra.mxu2 %v2169_v8  ;;  %v1276_v21 = vld [vmem:[#allocation2] sm:$0xf]  ;;  %v1489_v23 = vor.u32 %v1918_v7, %v1486_v12 }
  0x34   :  { %938 = vmatpush.bf16.msrb.mxu2 %v1665_v42  ;;  %v1742_v17 = vld [vmem:[#allocation5 + $0x390] sm:$0xf0]  ;;  %v1882_v18 = vld [vmem:[#allocation5 + $0x64] sm:$0xf]  ;;  %v1868_v22 = vld [vmem:[#allocation2 + $0xc] sm:$0xf0]  ;;  %v1617_v24 = vor.u32 %v1950_v13, %v1614_v14 }
  0x35   :  { %952 = vmatpush.bf16.msrb.mxu3 %v1793_v46  ;;  %v1342_v20 = vld [vmem:[#allocation5 + $0x70] sm:$0xf0]  ;;  %v1914_v25 = vld [vmem:[#allocation5 + $0x164] sm:$0xf]  ;;  %v2175_v26 = vor.u32 %v1868_v22, %v1276_v21  ;;  %v1745_v29 = vor.u32 %v1982_v16, %v1742_v17  ;;  %v1412_v9 = vld [vmem:[#allocation5 + $0xe8] sm:$0xf] }
  0x36   :  { %911 = vmatpush.bf16.msrb.mxu0 %v1393_v52  ;;  %904 = vmatmul.bf16.vlgmr.msra.gmra.mxu3 %v2171_v15  ;;  %v1866_v27 = vld [vmem:[#allocation2 + $0x4] sm:$0xf]  ;;  %v1278_v28 = vld [vmem:[#allocation2 + $0x10] sm:$0xf0]  ;;  %v1345_v36 = vor.u32 %v1882_v18, %v1342_v20  ;;  %v1901_v10 = vld [vmem:[#allocation5 + $0xf4] sm:$0xf0] }
  0x37   :  { %925 = vmatpush.bf16.msrb.mxu1 %v1521_v53  ;;  %v1470_v30 = vld [vmem:[#allocation5 + $0x170] sm:$0xf0]  ;;  %v1946_v31 = vld [vmem:[#allocation5 + $0x264] sm:$0xf]  ;;  %v2177_v33 = vor.u32 %v1866_v27, %v1278_v28  ;;  %862 = vmatmul.bf16.vlgmr.msra.gmra.mxu0 %v2175_v26  ;;  %v1933_v13 = vld [vmem:[#allocation5 + $0x1f4] sm:$0xf0]  ;;  %v1413_v22 = vor.u32 %v1901_v10, %v1412_v9 }
  0x38   :  { %939 = vmatpush.bf16.msrb.mxu2 %v1649_v54  ;;  %v1598_v32 = vld [vmem:[#allocation5 + $0x270] sm:$0xf0]  ;;  %v1978_v34 = vld [vmem:[#allocation5 + $0x364] sm:$0xf]  ;;  %v1473_v37 = vor.u32 %v1914_v25, %v1470_v30  ;;  %v1668_v14 = vld [vmem:[#allocation5 + $0x2e8] sm:$0xf] }
  0x39   :  { %953 = vmatpush.bf16.msrb.mxu3 %v1777_v58  ;;  %v1726_v35 = vld [vmem:[#allocation5 + $0x370] sm:$0xf0]  ;;  %876 = vmatmul.bf16.vlgmr.msra.gmra.mxu1 %v2177_v33  ;;  %v1601_v38 = vor.u32 %v1946_v31, %v1598_v32  ;;  %v1878_v39 = vld [vmem:[#allocation5 + $0x44] sm:$0xf]  ;;  %v1965_v16 = vld [vmem:[#allocation5 + $0x2f4] sm:$0xf0] }
  0x3a   :  { %912 = vmatpush.bf16.msrb.mxu0 %v1377_v1  ;;  %v1326_v40 = vld [vmem:[#allocation5 + $0x50] sm:$0xf0]  ;;  %v1910_v41 = vld [vmem:[#allocation5 + $0x144] sm:$0xf]  ;;  %v1729_v42 = vor.u32 %v1978_v34, %v1726_v35  ;;  %v1997_v20 = vld [vmem:[#allocation5 + $0x3f4] sm:$0xf0] }
  0x3b   :  { %926 = vmatpush.bf16.msrb.mxu1 %v1505_v5  ;;  %v1454_v43 = vld [vmem:[#allocation5 + $0x150] sm:$0xf0]  ;;  %v1942_v44 = vld [vmem:[#allocation5 + $0x244] sm:$0xf]  ;;  %v1329_v48 = vor.u32 %v1878_v39, %v1326_v40  ;;  %v1396_v25 = vld [vmem:[#allocation5 + $0xc8] sm:$0xf] }
  0x3c   :  { %940 = vmatpush.bf16.msrb.mxu2 %v1633_v6  ;;  %v1582_v45 = vld [vmem:[#allocation5 + $0x250] sm:$0xf0]  ;;  %v1974_v46 = vld [vmem:[#allocation5 + $0x344] sm:$0xf]  ;;  %v1457_v49 = vor.u32 %v1910_v41, %v1454_v43  ;;  %v1897_v27 = vld [vmem:[#allocation5 + $0xd4] sm:$0xf0] }
  0x3d   :  { %954 = vmatpush.bf16.msrb.mxu3 %v1761_v11  ;;  %v1710_v47 = vld [vmem:[#allocation5 + $0x350] sm:$0xf0]  ;;  %v1585_v50 = vor.u32 %v1942_v44, %v1582_v45  ;;  %v1874_v51 = vld [vmem:[#allocation5 + $0x24] sm:$0xf]  ;;  %v1540_v11 = vld [vmem:[#allocation5 + $0x1e8] sm:$0xf] }
  0x3e   :  { %913 = vmatpush.bf16.msrb.mxu0 %v1361_v19  ;;  %v1310_v52 = vld [vmem:[#allocation5 + $0x30] sm:$0xf0]  ;;  %v1906_v53 = vld [vmem:[#allocation5 + $0x124] sm:$0xf]  ;;  %v1713_v54 = vor.u32 %v1974_v46, %v1710_v47  ;;  %v1796_v19 = vld [vmem:[#allocation5 + $0x3e8] sm:$0xf] }
  0x3f   :  { %927 = vmatpush.bf16.msrb.mxu1 %v1489_v23  ;;  %v1438_v55 = vld [vmem:[#allocation5 + $0x130] sm:$0xf0]  ;;  %v1938_v56 = vld [vmem:[#allocation5 + $0x224] sm:$0xf]  ;;  %v1313_v60 = vor.u32 %v1874_v51, %v1310_v52  ;;  %v1541_v23 = vor.u32 %v1933_v13, %v1540_v11  ;;  %v1524_v28 = vld [vmem:[#allocation5 + $0x1c8] sm:$0xf] }
  0x40   :  { %941 = vmatpush.bf16.msrb.mxu2 %v1617_v24  ;;  %v1566_v57 = vld [vmem:[#allocation5 + $0x230] sm:$0xf0]  ;;  %v1970_v58 = vld [vmem:[#allocation5 + $0x324] sm:$0xf]  ;;  %v1441_v63 = vor.u32 %v1906_v53, %v1438_v55  ;;  %v1669_v24 = vor.u32 %v1965_v16, %v1668_v14  ;;  %v1929_v30 = vld [vmem:[#allocation5 + $0x1d4] sm:$0xf0] }
  0x41   :  { %955 = vmatpush.bf16.msrb.mxu3 %v1745_v29  ;;  %v1694_v59 = vld [vmem:[#allocation5 + $0x330] sm:$0xf0]  ;;  %v1870_v61 = vld [vmem:[#allocation5 + $0x4] sm:$0xf]  ;;  %v1569_v0 = vor.u32 %v1938_v56, %v1566_v57  ;;  %v1797_v29 = vor.u32 %v1997_v20, %v1796_v19  ;;  %v1652_v31 = vld [vmem:[#allocation5 + $0x2c8] sm:$0xf] }
  0x42   :  { %914 = vmatpush.bf16.msrb.mxu0 %v1345_v36  ;;  %v1294_v62 = vld [vmem:[#allocation5 + $0x10] sm:$0xf0]  ;;  %v1902_v1 = vld [vmem:[#allocation5 + $0x104] sm:$0xf]  ;;  %v1697_v4 = vor.u32 %v1970_v58, %v1694_v59  ;;  %v1961_v32 = vld [vmem:[#allocation5 + $0x2d4] sm:$0xf0]  ;;  %v1397_v36 = vor.u32 %v1897_v27, %v1396_v25 }
  0x43   :  { %928 = vmatpush.bf16.msrb.mxu1 %v1473_v37  ;;  %v1422_v2 = vld [vmem:[#allocation5 + $0x110] sm:$0xf0]  ;;  %v1934_v3 = vld [vmem:[#allocation5 + $0x204] sm:$0xf]  ;;  %v1297_v12 = vor.u32 %v1870_v61, %v1294_v62  ;;  %v1780_v34 = vld [vmem:[#allocation5 + $0x3c8] sm:$0xf]  ;;  %v1525_v37 = vor.u32 %v1929_v30, %v1524_v28 }
  0x44   :  { %942 = vmatpush.bf16.msrb.mxu2 %v1601_v38  ;;  %v1550_v5 = vld [vmem:[#allocation5 + $0x210] sm:$0xf0]  ;;  %v1966_v6 = vld [vmem:[#allocation5 + $0x304] sm:$0xf]  ;;  %v1425_v17 = vor.u32 %v1902_v1, %v1422_v2  ;;  %v1993_v35 = vld [vmem:[#allocation5 + $0x3d4] sm:$0xf0]  ;;  %v1653_v38 = vor.u32 %v1961_v32, %v1652_v31 }
  0x45   :  { %956 = vmatpush.bf16.msrb.mxu3 %v1729_v42  ;;  %v1678_v7 = vld [vmem:[#allocation5 + $0x310] sm:$0xf0]  ;;  %v1553_v18 = vor.u32 %v1934_v3, %v1550_v5  ;;  %v1380_v39 = vld [vmem:[#allocation5 + $0xa8] sm:$0xf]  ;;  %v1893_v40 = vld [vmem:[#allocation5 + $0xb4] sm:$0xf0]  ;;  %v1781_v42 = vor.u32 %v1993_v35, %v1780_v34 }
  0x46   :  { %915 = vmatpush.bf16.msrb.mxu0 %v1329_v48  ;;  %v1681_v21 = vor.u32 %v1966_v6, %v1678_v7  ;;  %v1508_v41 = vld [vmem:[#allocation5 + $0x1a8] sm:$0xf]  ;;  %v1925_v43 = vld [vmem:[#allocation5 + $0x1b4] sm:$0xf0]  ;;  %v1381_v48 = vor.u32 %v1893_v40, %v1380_v39 }
  0x47   :  { %929 = vmatpush.bf16.msrb.mxu1 %v1457_v49  ;;  %v1636_v44 = vld [vmem:[#allocation5 + $0x2a8] sm:$0xf]  ;;  %v1957_v45 = vld [vmem:[#allocation5 + $0x2b4] sm:$0xf0]  ;;  %v1509_v49 = vor.u32 %v1925_v43, %v1508_v41 }
  0x48   :  { %943 = vmatpush.bf16.msrb.mxu2 %v1585_v50  ;;  %v1764_v46 = vld [vmem:[#allocation5 + $0x3a8] sm:$0xf]  ;;  %v1989_v47 = vld [vmem:[#allocation5 + $0x3b4] sm:$0xf0]  ;;  %v1637_v50 = vor.u32 %v1957_v45, %v1636_v44 }
  0x49   :  { %957 = vmatpush.bf16.msrb.mxu3 %v1713_v54  ;;  %v1364_v51 = vld [vmem:[#allocation5 + $0x88] sm:$0xf]  ;;  %v1889_v52 = vld [vmem:[#allocation5 + $0x94] sm:$0xf0]  ;;  %v1765_v54 = vor.u32 %v1989_v47, %v1764_v46 }
  0x4a   :  { %916 = vmatpush.bf16.msrb.mxu0 %v1313_v60  ;;  %v1492_v53 = vld [vmem:[#allocation5 + $0x188] sm:$0xf]  ;;  %v1921_v55 = vld [vmem:[#allocation5 + $0x194] sm:$0xf0]  ;;  %v1365_v60 = vor.u32 %v1889_v52, %v1364_v51  ;;  %v1542_v52 = vld [vmem:[#allocation5 + $0x1f8] sm:$0xf0] }
  0x4b   :  { %930 = vmatpush.bf16.msrb.mxu1 %v1441_v63  ;;  %v1620_v56 = vld [vmem:[#allocation5 + $0x288] sm:$0xf]  ;;  %v1953_v57 = vld [vmem:[#allocation5 + $0x294] sm:$0xf0]  ;;  %v1493_v61 = vor.u32 %v1921_v55, %v1492_v53  ;;  %v1963_v53 = vld [vmem:[#allocation5 + $0x2ec] sm:$0xf] }
  0x4c   :  { %944 = vmatpush.bf16.msrb.mxu2 %v1569_v0  ;;  %v1748_v58 = vld [vmem:[#allocation5 + $0x388] sm:$0xf]  ;;  %v1985_v59 = vld [vmem:[#allocation5 + $0x394] sm:$0xf0]  ;;  %v1621_v62 = vor.u32 %v1953_v57, %v1620_v56  ;;  %v1995_v57 = vld [vmem:[#allocation5 + $0x3ec] sm:$0xf] }
  0x4d   :  { %958 = vmatpush.bf16.msrb.mxu3 %v1697_v4  ;;  %v1348_v63 = vld [vmem:[#allocation5 + $0x68] sm:$0xf]  ;;  %v1885_v0 = vld [vmem:[#allocation5 + $0x74] sm:$0xf0]  ;;  %v1749_v2 = vor.u32 %v1985_v59, %v1748_v58  ;;  %v1798_v58 = vld [vmem:[#allocation5 + $0x3f8] sm:$0xf0] }
  0x4e   :  { %917 = vmatpush.bf16.msrb.mxu0 %v1297_v12  ;;  %v1476_v1 = vld [vmem:[#allocation5 + $0x168] sm:$0xf]  ;;  %v1917_v3 = vld [vmem:[#allocation5 + $0x174] sm:$0xf0]  ;;  %v1349_v9 = vor.u32 %v1885_v0, %v1348_v63  ;;  %v1895_v63 = vld [vmem:[#allocation5 + $0xcc] sm:$0xf] }
  0x4f   :  { %931 = vmatpush.bf16.msrb.mxu1 %v1425_v17  ;;  %v1604_v4 = vld [vmem:[#allocation5 + $0x268] sm:$0xf]  ;;  %v1949_v5 = vld [vmem:[#allocation5 + $0x274] sm:$0xf0]  ;;  %v1477_v10 = vor.u32 %v1917_v3, %v1476_v1  ;;  %v1398_v0 = vld [vmem:[#allocation5 + $0xd8] sm:$0xf0] }
  0x50   :  { %945 = vmatpush.bf16.msrb.mxu2 %v1553_v18  ;;  %v1732_v6 = vld [vmem:[#allocation5 + $0x368] sm:$0xf]  ;;  %v1981_v7 = vld [vmem:[#allocation5 + $0x374] sm:$0xf0]  ;;  %v1605_v11 = vor.u32 %v1949_v5, %v1604_v4  ;;  %v1927_v1 = vld [vmem:[#allocation5 + $0x1cc] sm:$0xf] }
  0x51   :  { %959 = vmatpush.bf16.msrb.mxu3 %v1681_v21  ;;  %918 = vmatmul.bf16.vlgmr.msrb.gmra.mxu0 %v2175_v26  ;;  %v1332_v12 = vld [vmem:[#allocation5 + $0x48] sm:$0xf]  ;;  %v1881_v13 = vld [vmem:[#allocation5 + $0x54] sm:$0xf0]  ;;  %v1733_v16 = vor.u32 %v1981_v7, %v1732_v6  ;;  %v1526_v3 = vld [vmem:[#allocation5 + $0x1d8] sm:$0xf0] }
  0x52   :  { %966 = vmatpush.bf16.msra.mxu0 %v1413_v22  ;;  %932 = vmatmul.bf16.vlgmr.msrb.gmra.mxu1 %v2177_v33  ;;  %v1460_v14 = vld [vmem:[#allocation5 + $0x148] sm:$0xf]  ;;  %v1913_v17 = vld [vmem:[#allocation5 + $0x154] sm:$0xf0]  ;;  %v1333_v22 = vor.u32 %v1881_v13, %v1332_v12  ;;  %v1959_v4 = vld [vmem:[#allocation5 + $0x2cc] sm:$0xf] }
  0x53   :  { %980 = vmatpush.bf16.msra.mxu1 %v1541_v23  ;;  %946 = vmatmul.bf16.vlgmr.msrb.gmra.mxu2 %v2169_v8  ;;  %v1588_v18 = vld [vmem:[#allocation5 + $0x248] sm:$0xf]  ;;  %v1945_v19 = vld [vmem:[#allocation5 + $0x254] sm:$0xf0]  ;;  %v1461_v23 = vor.u32 %v1913_v17, %v1460_v14  ;;  %v1654_v5 = vld [vmem:[#allocation5 + $0x2d8] sm:$0xf0] }
  0x54   :  { %994 = vmatpush.bf16.msra.mxu2 %v1669_v24  ;;  %960 = vmatmul.bf16.vlgmr.msrb.gmra.mxu3 %v2171_v15  ;;  %v1716_v20 = vld [vmem:[#allocation5 + $0x348] sm:$0xf]  ;;  %v1977_v21 = vld [vmem:[#allocation5 + $0x354] sm:$0xf0]  ;;  %v1589_v24 = vor.u32 %v1945_v19, %v1588_v18  ;;  %v1991_v6 = vld [vmem:[#allocation5 + $0x3cc] sm:$0xf] }
  0x55   :  { %1008 = vmatpush.bf16.msra.mxu3 %v1797_v29  ;;  %v1316_v25 = vld [vmem:[#allocation5 + $0x28] sm:$0xf]  ;;  %v1877_v27 = vld [vmem:[#allocation5 + $0x34] sm:$0xf0]  ;;  %v1717_v29 = vor.u32 %v1977_v21, %v1716_v20  ;;  %v1782_v7 = vld [vmem:[#allocation5 + $0x3d8] sm:$0xf0] }
  0x56   :  { %967 = vmatpush.bf16.msra.mxu0 %v1397_v36  ;;  %v1444_v28 = vld [vmem:[#allocation5 + $0x128] sm:$0xf]  ;;  %v1909_v30 = vld [vmem:[#allocation5 + $0x134] sm:$0xf0]  ;;  %v1317_v36 = vor.u32 %v1877_v27, %v1316_v25  ;;  %v1891_v12 = vld [vmem:[#allocation5 + $0xac] sm:$0xf] }
  0x57   :  { %981 = vmatpush.bf16.msra.mxu1 %v1525_v37  ;;  %v1572_v31 = vld [vmem:[#allocation5 + $0x228] sm:$0xf]  ;;  %v1941_v32 = vld [vmem:[#allocation5 + $0x234] sm:$0xf0]  ;;  %v1445_v39 = vor.u32 %v1909_v30, %v1444_v28  ;;  %v1382_v13 = vld [vmem:[#allocation5 + $0xb8] sm:$0xf0] }
  0x58   :  { %995 = vmatpush.bf16.msra.mxu2 %v1653_v38  ;;  %v1700_v34 = vld [vmem:[#allocation5 + $0x328] sm:$0xf]  ;;  %v1973_v35 = vld [vmem:[#allocation5 + $0x334] sm:$0xf0]  ;;  %v1573_v40 = vor.u32 %v1941_v32, %v1572_v31  ;;  %v1923_v14 = vld [vmem:[#allocation5 + $0x1ac] sm:$0xf] }
  0x59   :  { %1009 = vmatpush.bf16.msra.mxu3 %v1781_v42  ;;  %v1300_v37 = vld [vmem:[#allocation5 + $0x8] sm:$0xf]  ;;  %v1873_v38 = vld [vmem:[#allocation5 + $0x14] sm:$0xf0]  ;;  %v1701_v44 = vor.u32 %v1973_v35, %v1700_v34  ;;  %v1510_v17 = vld [vmem:[#allocation5 + $0x1b8] sm:$0xf0] }
  0x5a   :  { %968 = vmatpush.bf16.msra.mxu0 %v1381_v48  ;;  %v1428_v41 = vld [vmem:[#allocation5 + $0x108] sm:$0xf]  ;;  %v1905_v42 = vld [vmem:[#allocation5 + $0x114] sm:$0xf0]  ;;  %v1899_v48 = vld [vmem:[#allocation5 + $0xec] sm:$0xf]  ;;  %v1301_v51 = vor.u32 %v1873_v38, %v1300_v37 }
  0x5b   :  { %982 = vmatpush.bf16.msra.mxu1 %v1509_v49  ;;  %v1556_v43 = vld [vmem:[#allocation5 + $0x208] sm:$0xf]  ;;  %v1937_v45 = vld [vmem:[#allocation5 + $0x214] sm:$0xf0]  ;;  %v1414_v49 = vld [vmem:[#allocation5 + $0xf8] sm:$0xf0]  ;;  %v1429_v55 = vor.u32 %v1905_v42, %v1428_v41 }
  0x5c   :  { %996 = vmatpush.bf16.msra.mxu2 %v1637_v50  ;;  %v1684_v46 = vld [vmem:[#allocation5 + $0x308] sm:$0xf]  ;;  %v1969_v47 = vld [vmem:[#allocation5 + $0x314] sm:$0xf0]  ;;  %v1931_v50 = vld [vmem:[#allocation5 + $0x1ec] sm:$0xf]  ;;  %v1557_v56 = vor.u32 %v1937_v45, %v1556_v43 }
  0x5d   :  { %1010 = vmatpush.bf16.msra.mxu3 %v1765_v54  ;;  %v1670_v54 = vld [vmem:[#allocation5 + $0x2f8] sm:$0xf0]  ;;  %v1685_v59 = vor.u32 %v1969_v47, %v1684_v46  ;;  %v1955_v18 = vld [vmem:[#allocation5 + $0x2ac] sm:$0xf] }
  0x5e   :  { %969 = vmatpush.bf16.msra.mxu0 %v1365_v60  ;;  %v1417_v60 = vor.u32 %v1899_v48, %v1414_v49  ;;  %v1638_v19 = vld [vmem:[#allocation5 + $0x2b8] sm:$0xf0]  ;;  %v1987_v20 = vld [vmem:[#allocation5 + $0x3ac] sm:$0xf] }
  0x5f   :  { %983 = vmatpush.bf16.msra.mxu1 %v1493_v61  ;;  %v1545_v61 = vor.u32 %v1931_v50, %v1542_v52  ;;  %v1766_v21 = vld [vmem:[#allocation5 + $0x3b8] sm:$0xf0]  ;;  %v1887_v25 = vld [vmem:[#allocation5 + $0x8c] sm:$0xf] }
  0x60   :  { %997 = vmatpush.bf16.msra.mxu2 %v1621_v62  ;;  %v1673_v62 = vor.u32 %v1963_v53, %v1670_v54  ;;  %v1366_v27 = vld [vmem:[#allocation5 + $0x98] sm:$0xf0]  ;;  %v1919_v28 = vld [vmem:[#allocation5 + $0x18c] sm:$0xf] }
  0x61   :  { %1011 = vmatpush.bf16.msra.mxu3 %v1749_v2  ;;  %v1801_v2 = vor.u32 %v1995_v57, %v1798_v58  ;;  %v1494_v30 = vld [vmem:[#allocation5 + $0x198] sm:$0xf0]  ;;  %v1951_v31 = vld [vmem:[#allocation5 + $0x28c] sm:$0xf] }
  0x62   :  { %970 = vmatpush.bf16.msra.mxu0 %v1349_v9  ;;  %v1401_v9 = vor.u32 %v1895_v63, %v1398_v0  ;;  %v1622_v32 = vld [vmem:[#allocation5 + $0x298] sm:$0xf0]  ;;  %v1983_v34 = vld [vmem:[#allocation5 + $0x38c] sm:$0xf]  ;;  %v1497_v37 = vor.u32 %v1919_v28, %v1494_v30  ;;  %v2004_v28 = vld [vmem:[#allocation7 + $0x30] sm:$0xff] }
  0x63   :  { %984 = vmatpush.bf16.msra.mxu1 %v1477_v10  ;;  %v1529_v10 = vor.u32 %v1927_v1, %v1526_v3  ;;  %v1750_v35 = vld [vmem:[#allocation5 + $0x398] sm:$0xf0]  ;;  %v1625_v38 = vor.u32 %v1951_v31, %v1622_v32  ;;  %v1915_v41 = vld [vmem:[#allocation5 + $0x16c] sm:$0xf] }
  0x64   :  { %998 = vmatpush.bf16.msra.mxu2 %v1605_v11  ;;  %v1657_v11 = vor.u32 %v1959_v4, %v1654_v5  ;;  %v1753_v42 = vor.u32 %v1983_v34, %v1750_v35  ;;  %v1478_v43 = vld [vmem:[#allocation5 + $0x178] sm:$0xf0]  ;;  %v1979_v46 = vld [vmem:[#allocation5 + $0x36c] sm:$0xf] }
  0x65   :  { %1012 = vmatpush.bf16.msra.mxu3 %v1733_v16  ;;  %v1785_v16 = vor.u32 %v1991_v6, %v1782_v7  ;;  %v1606_v45 = vld [vmem:[#allocation5 + $0x278] sm:$0xf0]  ;;  %v1481_v49 = vor.u32 %v1915_v41, %v1478_v43  ;;  %v1911_v53 = vld [vmem:[#allocation5 + $0x14c] sm:$0xf]  ;;  %v1998_v43 = vld [vmem:[#allocation7] sm:$0xff] }
  0x66   :  { %971 = vmatpush.bf16.msra.mxu0 %v1333_v22  ;;  %v1385_v22 = vor.u32 %v1891_v12, %v1382_v13  ;;  %v1734_v47 = vld [vmem:[#allocation5 + $0x378] sm:$0xf0]  ;;  %v1975_v58 = vld [vmem:[#allocation5 + $0x34c] sm:$0xf] }
  0x67   :  { %985 = vmatpush.bf16.msra.mxu1 %v1461_v23  ;;  %v1513_v23 = vor.u32 %v1923_v14, %v1510_v17  ;;  %v1334_v52 = vld [vmem:[#allocation5 + $0x58] sm:$0xf0]  ;;  %v1737_v54 = vor.u32 %v1979_v46, %v1734_v47  ;;  %v1875_v63 = vld [vmem:[#allocation5 + $0x2c] sm:$0xf]  ;;  %v2012_v47 = vld [vmem:[#allocation7 + $0x70] sm:$0xff] }
  0x68   :  { %999 = vmatpush.bf16.msra.mxu2 %v1589_v24  ;;  %v1641_v24 = vor.u32 %v1955_v18, %v1638_v19  ;;  %v1590_v57 = vld [vmem:[#allocation5 + $0x258] sm:$0xf0]  ;;  %v1907_v1 = vld [vmem:[#allocation5 + $0x12c] sm:$0xf] }
  0x69   :  { %1013 = vmatpush.bf16.msra.mxu3 %v1717_v29  ;;  %v1769_v29 = vor.u32 %v1987_v20, %v1766_v21  ;;  %v1318_v0 = vld [vmem:[#allocation5 + $0x38] sm:$0xf0]  ;;  %v1939_v4 = vld [vmem:[#allocation5 + $0x22c] sm:$0xf] }
  0x6a   :  { %972 = vmatpush.bf16.msra.mxu0 %v1317_v36  ;;  %v1369_v36 = vor.u32 %v1887_v25, %v1366_v27  ;;  %v1446_v3 = vld [vmem:[#allocation5 + $0x138] sm:$0xf0]  ;;  %v1971_v6 = vld [vmem:[#allocation5 + $0x32c] sm:$0xf] }
  0x6b   :  { %986 = vmatpush.bf16.msra.mxu1 %v1445_v39  ;;  %v1883_v39 = vld [vmem:[#allocation5 + $0x6c] sm:$0xf]  ;;  %v1574_v5 = vld [vmem:[#allocation5 + $0x238] sm:$0xf0] }
  0x6c   :  { %1000 = vmatpush.bf16.msra.mxu2 %v1573_v40  ;;  %v1350_v40 = vld [vmem:[#allocation5 + $0x78] sm:$0xf0]  ;;  %v1871_v12 = vld [vmem:[#allocation5 + $0xc] sm:$0xf] }
  0x6d   :  { %1014 = vmatpush.bf16.msra.mxu3 %v1701_v44  ;;  %v1947_v44 = vld [vmem:[#allocation5 + $0x26c] sm:$0xf]  ;;  %v1353_v48 = vor.u32 %v1883_v39, %v1350_v40  ;;  %v1702_v7 = vld [vmem:[#allocation5 + $0x338] sm:$0xf0]  ;;  %v2000_v39 = vld [vmem:[#allocation7 + $0x10] sm:$0xff] }
  0x6e   :  { %973 = vmatpush.bf16.msra.mxu0 %v1301_v51  ;;  %v1609_v50 = vor.u32 %v1947_v44, %v1606_v45  ;;  %v1879_v51 = vld [vmem:[#allocation5 + $0x4c] sm:$0xf]  ;;  %v1302_v13 = vld [vmem:[#allocation5 + $0x18] sm:$0xf0] }
  0x6f   :  { %987 = vmatpush.bf16.msra.mxu1 %v1429_v55  ;;  %v1462_v55 = vld [vmem:[#allocation5 + $0x158] sm:$0xf0]  ;;  %v1903_v14 = vld [vmem:[#allocation5 + $0x10c] sm:$0xf] }
  0x70   :  { %1001 = vmatpush.bf16.msra.mxu2 %v1557_v56  ;;  %v1943_v56 = vld [vmem:[#allocation5 + $0x24c] sm:$0xf]  ;;  %v1430_v17 = vld [vmem:[#allocation5 + $0x118] sm:$0xf0] }
  0x71   :  { %1015 = vmatpush.bf16.msra.mxu3 %v1685_v59  ;;  %974 = vmatmul.bf16.vlgmr.msra.gmra.mxu0 %v2175_v26  ;;  %v1718_v59 = vld [vmem:[#allocation5 + $0x358] sm:$0xf0]  ;;  %v1935_v18 = vld [vmem:[#allocation5 + $0x20c] sm:$0xf] }
  0x72   :  { %1022 = vmatpush.bf16.msrb.mxu0 %v1417_v60  ;;  %988 = vmatmul.bf16.vlgmr.msra.gmra.mxu1 %v2177_v33  ;;  %v1337_v60 = vor.u32 %v1879_v51, %v1334_v52  ;;  %v1558_v19 = vld [vmem:[#allocation5 + $0x218] sm:$0xf0]  ;;  %v1967_v20 = vld [vmem:[#allocation5 + $0x30c] sm:$0xf] }
  0x73   :  { %1036 = vmatpush.bf16.msrb.mxu1 %v1545_v61  ;;  %1002 = vmatmul.bf16.vlgmr.msra.gmra.mxu2 %v2169_v8  ;;  %v1465_v61 = vor.u32 %v1911_v53, %v1462_v55  ;;  %v1686_v21 = vld [vmem:[#allocation5 + $0x318] sm:$0xf0]  ;;  %v1999_v41 = vld [vmem:[#allocation7 + $0x8] sm:$0xff]  ;;  %v2010_v53 = vld [vmem:[#allocation7 + $0x60] sm:$0xff] }
  0x74   :  { %1050 = vmatpush.bf16.msrb.mxu2 %v1673_v62  ;;  %1016 = vmatmul.bf16.vlgmr.msra.gmra.mxu3 %v2171_v15  ;;  %v1593_v62 = vor.u32 %v1943_v56, %v1590_v57  ;;  %v1689_v25 = vor.u32 %v1967_v20, %v1686_v21  ;;  %v2005_v27 = vld [vmem:[#allocation7 + $0x38] sm:$0xff] }
  0x75   :  { %1064 = vmatpush.bf16.msrb.mxu3 %v1801_v2  ;;  %v1721_v2 = vor.u32 %v1975_v58, %v1718_v59  ;;  %v2013_v45 = vld [vmem:[#allocation7 + $0x78] sm:$0xff] }
  0x76   :  { %1023 = vmatpush.bf16.msrb.mxu0 %v1401_v9  ;;  %v1321_v9 = vor.u32 %v1875_v63, %v1318_v0  ;;  %v2009_v59 = vld [vmem:[#allocation7 + $0x58] sm:$0xff] }
  0x77   :  { %1037 = vmatpush.bf16.msrb.mxu1 %v1529_v10  ;;  %v1449_v10 = vor.u32 %v1907_v1, %v1446_v3 }
  0x78   :  { %1051 = vmatpush.bf16.msrb.mxu2 %v1657_v11  ;;  %v1577_v11 = vor.u32 %v1939_v4, %v1574_v5 }
  0x79   :  { %1065 = vmatpush.bf16.msrb.mxu3 %v1785_v16  ;;  %v1705_v16 = vor.u32 %v1971_v6, %v1702_v7 }
  0x7a   :  { %1024 = vmatpush.bf16.msrb.mxu0 %v1385_v22  ;;  %v1305_v22 = vor.u32 %v1871_v12, %v1302_v13 }
  0x7b   :  { %1038 = vmatpush.bf16.msrb.mxu1 %v1513_v23  ;;  %v1433_v23 = vor.u32 %v1903_v14, %v1430_v17  ;;  %v2006_v17 = vld [vmem:[#allocation7 + $0x40] sm:$0xff] }
  0x7c   :  { %1052 = vmatpush.bf16.msrb.mxu2 %v1641_v24  ;;  %v1561_v24 = vor.u32 %v1935_v18, %v1558_v19 }
  0x7d   :  { %1066 = vmatpush.bf16.msrb.mxu3 %v1769_v29  ;;  %v2003_v29 = vld [vmem:[#allocation7 + $0x28] sm:$0xff] }
  0x7e   :  { %1025 = vmatpush.bf16.msrb.mxu0 %v1369_v36 }
  0x7f   :  { %1039 = vmatpush.bf16.msrb.mxu1 %v1497_v37  ;;  %v2002_v37 = vld [vmem:[#allocation7 + $0x20] sm:$0xff] }
  0x80   :  { %1053 = vmatpush.bf16.msrb.mxu2 %v1625_v38 }
  0x81   :  { %1067 = vmatpush.bf16.msrb.mxu3 %v1753_v42 }
  0x82   :  { %1026 = vmatpush.bf16.msrb.mxu0 %v1353_v48 }
  0x83   :  { %1040 = vmatpush.bf16.msrb.mxu1 %v1481_v49 }
  0x84   :  { %1054 = vmatpush.bf16.msrb.mxu2 %v1609_v50  ;;  %v2011_v50 = vld [vmem:[#allocation7 + $0x68] sm:$0xff] }
  0x85   :  { %1068 = vmatpush.bf16.msrb.mxu3 %v1737_v54 }
  0x86   :  { %1027 = vmatpush.bf16.msrb.mxu0 %v1337_v60 }
  0x87   :  { %1041 = vmatpush.bf16.msrb.mxu1 %v1465_v61 }
  0x88   :  { %1055 = vmatpush.bf16.msrb.mxu2 %v1593_v62 }
  0x89   :  { %1069 = vmatpush.bf16.msrb.mxu3 %v1721_v2  ;;  %v2008_v2 = vld [vmem:[#allocation7 + $0x50] sm:$0xff] }
  0x8a   :  { %1028 = vmatpush.bf16.msrb.mxu0 %v1321_v9 }
  0x8b   :  { %1042 = vmatpush.bf16.msrb.mxu1 %v1449_v10  ;;  %v2007_v10 = vld [vmem:[#allocation7 + $0x48] sm:$0xff] }
  0x8c   :  { %1056 = vmatpush.bf16.msrb.mxu2 %v1577_v11 }
  0x8d   :  { %1070 = vmatpush.bf16.msrb.mxu3 %v1705_v16 }
  0x8e   :  { %1029 = vmatpush.bf16.msrb.mxu0 %v1305_v22 }
  0x8f   :  { %1043 = vmatpush.bf16.msrb.mxu1 %v1433_v23 }
  0x90   :  { %1057 = vmatpush.bf16.msrb.mxu2 %v1561_v24 }
  0x91   :  { %1071 = vmatpush.bf16.msrb.mxu3 %v1689_v25  ;;  %1030 = vmatmul.bf16.vlgmr.msrb.gmra.mxu0 %v2175_v26 }
  0x92   :  { %1044 = vmatmul.bf16.vlgmr.msrb.gmra.mxu1 %v2177_v33  ;;  %1220 = vmatpush.bf16.msra.mxu0 %v2005_v27  ;;  %v2001_v33 = vld [vmem:[#allocation7 + $0x18] sm:$0xff] }
  0x93   :  { %1058 = vmatmul.bf16.vlgmr.msrb.gmra.mxu2 %v2169_v8  ;;  %1234 = vmatpush.bf16.msra.mxu1 %v2013_v45 }
  0x94   :  { %1072 = vmatmul.bf16.vlgmr.msrb.gmra.mxu3 %v2171_v15 }
  0x96   :  { %1221 = vmatpush.bf16.msra.mxu0 %v2004_v28 }
  0x97   :  { %1235 = vmatpush.bf16.msra.mxu1 %v2012_v47 }
  0x9a   :  { %1222 = vmatpush.bf16.msra.mxu0 %v2003_v29 }
  0x9b   :  { %1236 = vmatpush.bf16.msra.mxu1 %v2011_v50 }
  0x9e   :  { %1223 = vmatpush.bf16.msra.mxu0 %v2002_v37 }
  0x9f   :  { %1237 = vmatpush.bf16.msra.mxu1 %v2010_v53 }
  0xa2   :  { %1224 = vmatpush.bf16.msra.mxu0 %v2001_v33 }
  0xa3   :  { %1238 = vmatpush.bf16.msra.mxu1 %v2009_v59 }
  0xa6   :  { %1225 = vmatpush.bf16.msra.mxu0 %v2000_v39 }
  0xa7   :  { %1239 = vmatpush.bf16.msra.mxu1 %v2008_v2 }
  0xaa   :  { %1226 = vmatpush.bf16.msra.mxu0 %v1999_v41 }
  0xab   :  { %1240 = vmatpush.bf16.msra.mxu1 %v2007_v10 }
  0xae   :  { %1227 = vmatpush.bf16.msra.mxu0 %v1998_v43 }
  0xaf   :  { %1241 = vmatpush.bf16.msra.mxu1 %v2006_v17 }
  0xb4   :  { %v863_v30 = vpop.f32.mrf.mxu0 }
  0xb6   :  { %v877_v31 = vpop.f32.mrf.mxu1  ;;  %v891_v32 = vpop.f32.mrf.mxu2 }
  0xb7   :  { %v878_v56 = vadd.f32 %v877_v31, %v863_v30 }
  0xb9   :  { %v905_v34 = vpop.f32.mrf.mxu3  ;;  %v892_v63 = vadd.f32 %v891_v32, %v878_v56 }
  0xbb   :  { %v906_v5 = vadd.f32 %v905_v34, %v892_v63 }
  0xbc   :  { %v865_v35 = vpop.f32.mrf.mxu0 }
  0xbd   :  { %v1078_v13 = vmul.f32 %v906_v5, %v906_v5 }
  0xbe   :  { %v879_v36 = vpop.f32.mrf.mxu1  ;;  %v893_v26 = vpop.f32.mrf.mxu2 }
  0xbf   :  { %v880_v57 = vadd.f32 %v879_v36, %v865_v35 }
  0xc1   :  { %v907_v38 = vpop.f32.mrf.mxu3  ;;  %v894_v0 = vadd.f32 %v893_v26, %v880_v57 }
  0xc3   :  { %v908_v6 = vadd.f32 %v907_v38, %v894_v0 }
  0xc5   :  { %v1080_v14 = vmul.f32 %v908_v6, %v908_v6 }
  0xce   :  { %v919_v8 = vpop.f32.mrf.mxu0 }
  0xcf   :  { %v933_v15 = vpop.f32.mrf.mxu1 }
  0xd0   :  { %v934_v25 = vadd.f32 %v933_v15, %v919_v8 }
  0xd6   :  { %v2193_v40 = vpop.f32.mrf.mxu2  ;;  %v921_v44 = vpop.f32.mrf.mxu0 }
  0xd7   :  { %v2195_v42 = vpop.f32.mrf.mxu3  ;;  %v935_v46 = vpop.f32.mrf.mxu1  ;;  %v948_v32 = vadd.f32 %v2193_v40, %v934_v25 }
  0xd8   :  { %v936_v27 = vadd.f32 %v935_v46, %v921_v44 }
  0xd9   :  { %v962_v26 = vadd.f32 %v2195_v42, %v948_v32 }
  0xdb   :  { %v1079_v45 = vmul.f32 %v962_v26, %v962_v26 }
  0xde   :  { %v949_v48 = vpop.f32.mrf.mxu2 }
  0xdf   :  { %v963_v49 = vpop.f32.mrf.mxu3  ;;  %v950_v34 = vadd.f32 %v949_v48, %v936_v27 }
  0xe1   :  { %v964_v33 = vadd.f32 %v963_v49, %v950_v34 }
  0xe3   :  { %v1081_v8 = vmul.f32 %v964_v33, %v964_v33 }
  0xee   :  { %v975_v51 = vpop.f32.mrf.mxu0 }
  0xef   :  { %v989_v52 = vpop.f32.mrf.mxu1 }
  0xf0   :  { %v990_v54 = vadd.f32 %v989_v52, %v975_v51 }
  0xf6   :  { %v1003_v55 = vpop.f32.mrf.mxu2  ;;  %v977_v61 = vpop.f32.mrf.mxu0 }
  0xf7   :  { %v1017_v58 = vpop.f32.mrf.mxu3  ;;  %v1004_v60 = vadd.f32 %v1003_v55, %v990_v54  ;;  %v991_v62 = vpop.f32.mrf.mxu1 }
  0xf8   :  { %v992_v1 = vadd.f32 %v991_v62, %v977_v61 }
  0xf9   :  { %v1018_v3 = vadd.f32 %v1017_v58, %v1004_v60 }
  0xfb   :  { %v1082_v11 = vmul.f32 %v1018_v3, %v1018_v3 }
  0xfd   :  { %v1086_v18 = vadd.f32 %v1082_v11, %v1078_v13 }
  0xfe   :  { %v1005_v4 = vpop.f32.mrf.mxu2 }
  0xff   :  { %v1006_v7 = vadd.f32 %v1005_v4, %v992_v1  ;;  %v1019_v9 = vpop.f32.mrf.mxu3 }
 0x101   :  { %v1020_v12 = vadd.f32 %v1019_v9, %v1006_v7 }
 0x103   :  { %v1084_v16 = vmul.f32 %v1020_v12, %v1020_v12 }
 0x105   :  { %v1088_v19 = vadd.f32 %v1084_v16, %v1080_v14 }
 0x107   :  { %v1090_v20 = vpack.c.bf16 %v1088_v19, %v1086_v18 }
 0x109   :  { %1228 = vmatmul.bf16.vlgmr.msra.gmra.mxu0 %v1090_v20 }
 0x10e   :  { %v1031_v21 = vpop.f32.mrf.mxu0 }
 0x10f   :  { %v1045_v22 = vpop.f32.mrf.mxu1 }
 0x110   :  { %v1046_v23 = vadd.f32 %v1045_v22, %v1031_v21 }
 0x116   :  { %v1059_v24 = vpop.f32.mrf.mxu2  ;;  %v1033_v30 = vpop.f32.mrf.mxu0 }
 0x117   :  { %v1073_v28 = vpop.f32.mrf.mxu3  ;;  %v1060_v29 = vadd.f32 %v1059_v24, %v1046_v23  ;;  %v1047_v31 = vpop.f32.mrf.mxu1 }
 0x118   :  { %v1048_v36 = vadd.f32 %v1047_v31, %v1033_v30 }
 0x119   :  { %v1074_v35 = vadd.f32 %v1073_v28, %v1060_v29 }
 0x11b   :  { %v1083_v41 = vmul.f32 %v1074_v35, %v1074_v35 }
 0x11d   :  { %v1087_v44 = vadd.f32 %v1083_v41, %v1079_v45 }
 0x11e   :  { %v1061_v37 = vpop.f32.mrf.mxu2 }
 0x11f   :  { %v1062_v38 = vadd.f32 %v1061_v37, %v1048_v36  ;;  %v1075_v39 = vpop.f32.mrf.mxu3 }
 0x121   :  { %v1076_v43 = vadd.f32 %v1075_v39, %v1062_v38 }
 0x123   :  { %v1085_v15 = vmul.f32 %v1076_v43, %v1076_v43 }
 0x125   :  { %v1089_v46 = vadd.f32 %v1085_v15, %v1081_v8 }
 0x127   :  { %v1091_v47 = vpack.c.bf16 %v1089_v46, %v1087_v44 }
 0x129   :  { %1242 = vmatmul.bf16.vlgmr.msra.gmra.mxu1 %v1091_v47 }
 0x186   :  { %v1229_v50 = vpop.f32.mrf.mxu0 }
 0x187   :  { %v1230_v40 = vadd.f32 1e-06, %v1229_v50 }
 0x18e   :  { %v1231_v52 = vpop.f32.mrf.mxu0 }
 0x18f   :  { %v1232_v53 = vadd.f32 1e-06, %v1231_v52 }
 0x1a6   :  { %v1243_v48 = vpop.f32.mrf.mxu1 }
 0x1a7   :  { %v1244_v51 = vadd.f32 %v1243_v48, %v1230_v40 }
 0x1a9   :  { %2024 = vlog2.f32 %v1244_v51 }
 0x1ae   :  { %v1245_v42 = vpop.f32.mrf.mxu1 }
 0x1af   :  { %v2025_v49 = vpop.eup %2024  ;;  %v1246_v54 = vadd.f32 %v1245_v42, %v1232_v53 }
 0x1b0   :  { %v1249_v55 = vmul.f32 0.6931472, %v2025_v49 }
 0x1b1   :  { %2026 = vlog2.f32 %v1246_v54 }
 0x1b2   :  { %1252 = vst [vmem:[#allocation8] sm:$0xff] %v1249_v55 }
 0x1b7   :  { %v2027_v56 = vpop.eup %2026 }
 0x1b8   :  { %v1251_v57 = vmul.f32 0.6931472, %v2027_v56 }
 0x1ba   :  { %1253 = vst [vmem:[#allocation8 + $0x8] sm:$0xff] %v1251_v57 }
 0x1bb   :  { %1266 = dma.vmem_to_hbm [thread:$0]  %s1259_s2, 256, %s1261_s5, [#allocation4], %s2138_s6, %s2138_s6, %s2139_s7  }
 0x1bc   :  { %2128 = dma.done.wait [#allocation4], 256  }
 0x1bd   :  { %2129 = vsyncadd [#allocation4], 4294967040 }
 0x1be   :  { %1271 = vsyncpa [#allocation3], 1 }
 0x1bf   :  { %1272 = vsyncpa [#allocation6], 1 }
 0x1c0   :  { %1273 = vsyncpa [#allocation4], 1 }

</bundles_post_ra>
